<compile_context>
chip_gen: v7x
topology: tpu7x:2x2x1
jax: 0.10.0
libtpu: 0.0.40
codegen_flags: <defaults>
</compile_context>

<pallas_src>
import functools

import jax
import jax.numpy as jnp
from jax.experimental import pallas as pl
from jax.experimental.pallas import tpu as pltpu


def _class_attention_kernel(x_ref, wq_ref, wk_ref, wv_ref, wproj_ref, bproj_ref,
                            sch_ref, shc_ref, o_ref, *, mm_dtype):
    Bb, N, C = x_ref.shape
    H = sch_ref.shape[1]

    x = x_ref[...]                                   # (Bb, N, C), original dtype
    x_mm = x.astype(mm_dtype)

    # --- class-token query only (softmax scale already folded into w_q) ----
    q_cls = jnp.dot(x_mm[:, 0, :], wq_ref[...],
                    preferred_element_type=jnp.float32)           # (Bb, C)

    # --- shared K / V projections: two big-M matmuls, no post-slice copies --
    x_flat = x_mm.reshape(Bb * N, C)
    k = jnp.dot(x_flat, wk_ref[...],
                preferred_element_type=jnp.float32).reshape(Bb, N, C)
    v = jnp.dot(x_flat, wv_ref[...],
                preferred_element_type=jnp.float32).reshape(Bb, N, C)

    # --- per-head class-token logits via head-selector matmul: (Bb, N, H) ---
    kq = k * q_cls[:, None, :]                       # (Bb, N, C), VPU
    logits = jnp.dot(kq.reshape(Bb * N, C), sch_ref[...],
                     preferred_element_type=jnp.float32).reshape(Bb, N, H)

    # --- softmax over tokens (axis=1), f32 ----------------------------------
    m = jnp.max(logits, axis=1, keepdims=True)
    p = jnp.exp(logits - m)
    p = p / jnp.sum(p, axis=1, keepdims=True)

    # --- broadcast head probs back to channels (MXU) and weight V -----------
    pc = jnp.dot(p.reshape(Bb * N, H), shc_ref[...],
                 preferred_element_type=jnp.float32).reshape(Bb, N, C)
    cls = jnp.sum(pc * v, axis=1)                    # (Bb, C)

    # --- output projection (+ bias) ------------------------------------------
    cls_out = jnp.dot(cls.astype(mm_dtype), wproj_ref[...],
                      preferred_element_type=jnp.float32) + bproj_ref[...]

    # --- fused pass-through: full dense block store, then overwrite row 0 ---
    o_ref[...] = x.astype(o_ref.dtype)
    o_ref[:, 0:1, :] = cls_out[:, None, :].astype(o_ref.dtype)


def class_attention(x, w_qkv, w_proj, b_proj, *, num_heads,
                    batch_block=None, mm_dtype=jnp.bfloat16,
                    vmem_limit_bytes=None):
    """x: (B, N, C).  Returns (B, N, C) matching the PyTorch forward."""
    B, N, C = x.shape
    H = num_heads
    assert C % H == 0, "dim must be divisible by num_heads"
    hd = C // H
    scale = hd ** (-0.5)
    f32 = jnp.float32

    # Split fused QKV (Q is only ever used for the class token); fold the
    # softmax scale into w_q in f32, then cast MXU operands to mm_dtype.
    w_q = (w_qkv[:, 0 * C:1 * C].astype(f32) * scale).astype(mm_dtype)
    w_k = w_qkv[:, 1 * C:2 * C].astype(mm_dtype)
    w_v = w_qkv[:, 2 * C:3 * C].astype(mm_dtype)
    w_p = w_proj.astype(mm_dtype)
    b_p = b_proj.reshape(1, C).astype(f32)

    # Head-selector matrices, built once outside the grid body.
    head_of_ch = jnp.arange(C, dtype=jnp.int32) // hd
    heads = jnp.arange(H, dtype=jnp.int32)
    s_ch = (head_of_ch[:, None] == heads[None, :]).astype(f32)   # (C, H)
    s_hc = (heads[:, None] == head_of_ch[None, :]).astype(f32)   # (H, C)

    # --- VMEM budget & batch_block -------------------------------------------
    if vmem_limit_bytes is None:
        try:
            cap = int(pltpu.get_tpu_info().vmem_capacity_bytes)
        except Exception:
            cap = 64 << 20                       # conservative fallback
        # ~48 MiB on v7x (64 MiB physical), ~96 MiB on v5e/v6e (128 MiB).
        vmem_limit_bytes = min((cap * 3) // 4, 100 << 20)

    x_item = x.dtype.itemsize
    mm_item = jnp.dtype(mm_dtype).itemsize
    weight_bytes = 4 * C * C * mm_item + C * 4 + 2 * C * H * 4
    # Per batch element: x block + out block (double-buffered by the pipeline),
    # f32 intermediates (k, v, kq, pc), the mm_dtype copy of x, plus headroom.
    per_elem = N * C * (2 * x_item + 2 * x_item + 4 * 4 + mm_item)
    per_elem = int(per_elem * 1.25) + 4 * N * H

    if batch_block is None:
        budget = int(vmem_limit_bytes * 0.8) - 2 * weight_bytes
        max_bb = max(1, budget // per_elem)
        if B >= 2:
            max_bb = min(max_bb, (B + 1) // 2)   # >= 2 grid steps (megacore/v7x)
        max_bb = min(max_bb, B)
        # Prefer an exact divisor of B (avoids padding); only pad when the best
        # divisor is much smaller than the VMEM-optimal block (e.g. prime B).
        div = max(d for d in range(1, max_bb + 1) if B % d == 0)
        batch_block = div if div * 2 >= max_bb else max_bb
    bb = max(1, min(batch_block, B))

    B_pad = -(-B // bb) * bb
    x_in = x if B_pad == B else jnp.pad(x, ((0, B_pad - B), (0, 0), (0, 0)))
    grid = (B_pad // bb,)

    kernel = functools.partial(_class_attention_kernel, mm_dtype=mm_dtype)

    def _run(single_buffer_weights):
        if single_buffer_weights:
            def wspec(shape):
                return pl.BlockSpec(shape, lambda b: (0,) * len(shape),
                                    pipeline_mode=pl.Buffered(1))
        else:
            def wspec(shape):
                return pl.BlockSpec(shape, lambda b: (0,) * len(shape))
        return pl.pallas_call(
            kernel,
            out_shape=jax.ShapeDtypeStruct((B_pad, N, C), x.dtype),
            grid_spec=pltpu.PrefetchScalarGridSpec(
                num_scalar_prefetch=0,
                grid=grid,
                in_specs=[
                    pl.BlockSpec((bb, N, C), lambda b: (b, 0, 0)),   # x
                    wspec((C, C)),       # w_q (scale folded)
                    wspec((C, C)),       # w_k
                    wspec((C, C)),       # w_v
                    wspec((C, C)),       # w_proj
                    wspec((1, C)),       # b_proj
                    wspec((C, H)),       # s_ch
                    wspec((H, C)),       # s_hc
                ],
                out_specs=pl.BlockSpec((bb, N, C), lambda b: (b, 0, 0)),
            ),
            compiler_params=pltpu.CompilerParams(
                dimension_semantics=("parallel",),
                vmem_limit_bytes=int(vmem_limit_bytes)),
        )(x_in, w_q, w_k, w_v, w_p, b_p, s_ch, s_hc)

    try:
        out = _run(True)      # single-buffered constant-index weights
    except Exception:
        out = _run(False)     # fallback if pl.Buffered(1) is rejected
    return out if B_pad == B else out[:B]


def class_attention_ref(x, w_qkv, w_proj, b_proj, *, num_heads):
    """Pure-JAX reference mirroring the PyTorch forward exactly."""
    B, N, C = x.shape
    hd = C // num_heads
    scale = hd ** (-0.5)
    qkv = x @ w_qkv                                        # (B, N, 3C)
    qkv = qkv.reshape(B, N, 3, num_heads, hd)
    qkv = jnp.transpose(qkv, (2, 0, 3, 1, 4))              # (3, B, H, N, hd)
    q, k, v = qkv[0], qkv[1], qkv[2]
    qc = q[:, :, 0:1]                                      # (B, H, 1, hd)
    attn = jnp.sum(qc * k, axis=-1) * scale                # (B, H, N)
    attn = jax.nn.softmax(attn, axis=-1)
    cls = jnp.einsum('bhn,bhnd->bhd', attn, v)             # (B, H, hd)
    cls = cls.reshape(B, 1, C)
    cls = cls @ w_proj + b_proj
    return jnp.concatenate([cls, x[:, 1:]], axis=1)


if __name__ == "__main__":
    B, N, C, H = 2, 8, 32, 4

    key = jax.random.PRNGKey(0)
    kx, kq, kp, kb = jax.random.split(key, 4)
    x = jax.random.normal(kx, (B, N, C), dtype=jnp.float32)
    # Deterministic synthetic weights (nn.Linear(dim, 3*dim), nn.Linear(dim, dim)).
    w_qkv = jax.random.normal(kq, (C, 3 * C), dtype=jnp.float32) * 0.05
    w_proj = jax.random.normal(kp, (C, C), dtype=jnp.float32) * 0.05
    b_proj = jax.random.normal(kb, (1, C), dtype=jnp.float32) * 0.05

    ref = class_attention_ref(x, w_qkv, w_proj, b_proj, num_heads=H)

    # f32 MXU path: tight tolerance against the reference.
    out_f32 = jax.block_until_ready(
        class_attention(x, w_qkv, w_proj, b_proj, num_heads=H,
                        mm_dtype=jnp.float32))
    assert out_f32.shape == (B, N, C)
    assert jnp.allclose(out_f32, ref, atol=1e-4, rtol=1e-4), "f32 mismatch vs reference"

    # Default bf16-operand path (f32 accumulation / softmax): looser tolerance.
    out_bf16 = jax.block_until_ready(
        class_attention(x, w_qkv, w_proj, b_proj, num_heads=H))
    assert out_bf16.shape == (B, N, C)
    assert jnp.allclose(out_bf16, ref, atol=5e-2, rtol=5e-2), "bf16 mismatch vs reference"

    print("KERNEL_OK")
</pallas_src>

<mosaic_0001>
module attributes {stable_mosaic.version = 11 : i64} {
  func.func @_class_attention_kernel(%arg0: i32, %arg1: memref<1x8x32xf32, #tpu.memory_space<vmem>>, %arg2: memref<32x32xf32, #tpu.memory_space<vmem>>, %arg3: memref<32x32xf32, #tpu.memory_space<vmem>>, %arg4: memref<32x32xf32, #tpu.memory_space<vmem>>, %arg5: memref<32x32xf32, #tpu.memory_space<vmem>>, %arg6: memref<1x32xf32, #tpu.memory_space<vmem>>, %arg7: memref<32x4xf32, #tpu.memory_space<vmem>>, %arg8: memref<4x32xf32, #tpu.memory_space<vmem>>, %arg9: memref<1x8x32xf32, #tpu.memory_space<vmem>>) attributes {dimension_semantics = [#tpu.dimension_semantics<parallel>], iteration_bounds = array<i64: 2>, scalar_prefetch = 0 : i64, scratch_operands = 0 : i64, tpu.core_type = #tpu.core_type<tc>, window_params = [{transform_indices = @transform_0, window_bounds = array<i64: 1, 8, 32>}, {pipeline_mode = #tpu.pipeline_mode<synchronous>, transform_indices = @transform_1, window_bounds = array<i64: 32, 32>}, {pipeline_mode = #tpu.pipeline_mode<synchronous>, transform_indices = @transform_2, window_bounds = array<i64: 32, 32>}, {pipeline_mode = #tpu.pipeline_mode<synchronous>, transform_indices = @transform_3, window_bounds = array<i64: 32, 32>}, {pipeline_mode = #tpu.pipeline_mode<synchronous>, transform_indices = @transform_4, window_bounds = array<i64: 32, 32>}, {pipeline_mode = #tpu.pipeline_mode<synchronous>, transform_indices = @transform_5, window_bounds = array<i64: 1, 32>}, {pipeline_mode = #tpu.pipeline_mode<synchronous>, transform_indices = @transform_6, window_bounds = array<i64: 32, 4>}, {pipeline_mode = #tpu.pipeline_mode<synchronous>, transform_indices = @transform_7, window_bounds = array<i64: 4, 32>}, {transform_indices = @transform_8, window_bounds = array<i64: 1, 8, 32>}]} {
    %c0 = arith.constant 0 : index
    %c0_0 = arith.constant 0 : index
    %c0_1 = arith.constant 0 : index
    %0 = vector.load %arg1[%c0, %c0_0, %c0_1] : memref<1x8x32xf32, #tpu.memory_space<vmem>>, vector<1x8x32xf32>
    %1 = vector.extract_strided_slice %0 {offsets = [0, 0, 0], sizes = [1, 1, 32], strides = [1, 1, 1]} : vector<1x8x32xf32> to vector<1x1x32xf32>
    %2 = vector.shape_cast %1 : vector<1x1x32xf32> to vector<1x32xf32>
    %c0_2 = arith.constant 0 : index
    %c0_3 = arith.constant 0 : index
    %3 = vector.load %arg2[%c0_2, %c0_3] : memref<32x32xf32, #tpu.memory_space<vmem>>, vector<32x32xf32>
    %cst = arith.constant dense<0.000000e+00> : vector<1x32xf32>
    %4 = tpu.matmul %2, %3, %cst {dimension_numbers = #tpu.dot_dimension_numbers<[1], [0], [0], [1], [0, 0, 1, 1], [], []>} : vector<1x32xf32>, vector<32x32xf32>, vector<1x32xf32> -> vector<1x32xf32>
    %5 = vector.shape_cast %0 : vector<1x8x32xf32> to vector<8x32xf32>
    %c0_4 = arith.constant 0 : index
    %c0_5 = arith.constant 0 : index
    %6 = vector.load %arg3[%c0_4, %c0_5] : memref<32x32xf32, #tpu.memory_space<vmem>>, vector<32x32xf32>
    %cst_6 = arith.constant dense<0.000000e+00> : vector<8x32xf32>
    %7 = tpu.matmul %5, %6, %cst_6 {dimension_numbers = #tpu.dot_dimension_numbers<[1], [0], [0], [1], [0, 0, 1, 1], [], []>} : vector<8x32xf32>, vector<32x32xf32>, vector<8x32xf32> -> vector<8x32xf32>
    %8 = vector.shape_cast %7 : vector<8x32xf32> to vector<1x8x32xf32>
    %c0_7 = arith.constant 0 : index
    %c0_8 = arith.constant 0 : index
    %9 = vector.load %arg4[%c0_7, %c0_8] : memref<32x32xf32, #tpu.memory_space<vmem>>, vector<32x32xf32>
    %cst_9 = arith.constant dense<0.000000e+00> : vector<8x32xf32>
    %10 = tpu.matmul %5, %9, %cst_9 {dimension_numbers = #tpu.dot_dimension_numbers<[1], [0], [0], [1], [0, 0, 1, 1], [], []>} : vector<8x32xf32>, vector<32x32xf32>, vector<8x32xf32> -> vector<8x32xf32>
    %11 = vector.shape_cast %10 : vector<8x32xf32> to vector<1x8x32xf32>
    %12 = vector.shape_cast %4 : vector<1x32xf32> to vector<1x1x32xf32>
    %13 = vector.broadcast %12 : vector<1x1x32xf32> to vector<1x8x32xf32>
    %14 = arith.mulf %8, %13 : vector<1x8x32xf32>
    %15 = vector.shape_cast %14 : vector<1x8x32xf32> to vector<8x32xf32>
    %c0_10 = arith.constant 0 : index
    %c0_11 = arith.constant 0 : index
    %16 = vector.load %arg7[%c0_10, %c0_11] : memref<32x4xf32, #tpu.memory_space<vmem>>, vector<32x4xf32>
    %cst_12 = arith.constant dense<0.000000e+00> : vector<8x4xf32>
    %17 = tpu.matmul %15, %16, %cst_12 {dimension_numbers = #tpu.dot_dimension_numbers<[1], [0], [0], [1], [0, 0, 1, 1], [], []>} : vector<8x32xf32>, vector<32x4xf32>, vector<8x4xf32> -> vector<8x4xf32>
    %18 = vector.shape_cast %17 : vector<8x4xf32> to vector<1x8x4xf32>
    %cst_13 = arith.constant dense<0xFF800000> : vector<1x4xf32>
    %19 = vector.multi_reduction <maximumf>, %18, %cst_13 [1] : vector<1x8x4xf32> to vector<1x4xf32>
    %20 = vector.shape_cast %19 : vector<1x4xf32> to vector<1x1x4xf32>
    %21 = vector.broadcast %20 : vector<1x1x4xf32> to vector<1x8x4xf32>
    %22 = arith.subf %18, %21 : vector<1x8x4xf32>
    %23 = math.exp %22 : vector<1x8x4xf32>
    %cst_14 = arith.constant dense<0.000000e+00> : vector<1x4xf32>
    %24 = vector.multi_reduction <add>, %23, %cst_14 [1] : vector<1x8x4xf32> to vector<1x4xf32>
    %25 = vector.shape_cast %24 : vector<1x4xf32> to vector<1x1x4xf32>
    %26 = vector.broadcast %25 : vector<1x1x4xf32> to vector<1x8x4xf32>
    %27 = arith.divf %23, %26 : vector<1x8x4xf32>
    %28 = vector.shape_cast %27 : vector<1x8x4xf32> to vector<8x4xf32>
    %c0_15 = arith.constant 0 : index
    %c0_16 = arith.constant 0 : index
    %29 = vector.load %arg8[%c0_15, %c0_16] : memref<4x32xf32, #tpu.memory_space<vmem>>, vector<4x32xf32>
    %cst_17 = arith.constant dense<0.000000e+00> : vector<8x32xf32>
    %30 = tpu.matmul %28, %29, %cst_17 {dimension_numbers = #tpu.dot_dimension_numbers<[1], [0], [0], [1], [0, 0, 1, 1], [], []>} : vector<8x4xf32>, vector<4x32xf32>, vector<8x32xf32> -> vector<8x32xf32>
    %31 = vector.shape_cast %30 : vector<8x32xf32> to vector<1x8x32xf32>
    %32 = arith.mulf %31, %11 : vector<1x8x32xf32>
    %cst_18 = arith.constant dense<0.000000e+00> : vector<1x32xf32>
    %33 = vector.multi_reduction <add>, %32, %cst_18 [1] : vector<1x8x32xf32> to vector<1x32xf32>
    %c0_19 = arith.constant 0 : index
    %c0_20 = arith.constant 0 : index
    %34 = vector.load %arg5[%c0_19, %c0_20] : memref<32x32xf32, #tpu.memory_space<vmem>>, vector<32x32xf32>
    %cst_21 = arith.constant dense<0.000000e+00> : vector<1x32xf32>
    %35 = tpu.matmul %33, %34, %cst_21 {dimension_numbers = #tpu.dot_dimension_numbers<[1], [0], [0], [1], [0, 0, 1, 1], [], []>} : vector<1x32xf32>, vector<32x32xf32>, vector<1x32xf32> -> vector<1x32xf32>
    %c0_22 = arith.constant 0 : index
    %c0_23 = arith.constant 0 : index
    %36 = vector.load %arg6[%c0_22, %c0_23] : memref<1x32xf32, #tpu.memory_space<vmem>>, vector<1x32xf32>
    %37 = arith.addf %35, %36 : vector<1x32xf32>
    %c0_24 = arith.constant 0 : index
    %c0_25 = arith.constant 0 : index
    %c0_26 = arith.constant 0 : index
    %38 = vector.load %arg9[%c0_24, %c0_25, %c0_26] : memref<1x8x32xf32, #tpu.memory_space<vmem>>, vector<1x8x32xf32>
    tpu.vector_store %arg9[%c0_24, %c0_25, %c0_26], %0 {strides = array<i32>} : memref<1x8x32xf32, #tpu.memory_space<vmem>>, vector<1x8x32xf32>,
    %39 = vector.shape_cast %37 : vector<1x32xf32> to vector<1x1x32xf32>
    %c0_27 = arith.constant 0 : index
    %c0_28 = arith.constant 0 : index
    %c0_29 = arith.constant 0 : index
    %40 = vector.load %arg9[%c0_27, %c0_28, %c0_29] : memref<1x8x32xf32, #tpu.memory_space<vmem>>, vector<1x1x32xf32>
    tpu.vector_store %arg9[%c0_27, %c0_28, %c0_29], %39 {strides = array<i32>} : memref<1x8x32xf32, #tpu.memory_space<vmem>>, vector<1x1x32xf32>,
    return
  }
  func.func @transform_0(%arg0: i32) -> (i32, i32, i32) {
    %c0_i32 = arith.constant 0 : i32
    %c0_i32_0 = arith.constant 0 : i32
    %c0_i32_1 = arith.constant 0 : i32
    return %arg0, %c0_i32, %c0_i32_0 : i32, i32, i32
  }
  func.func @transform_1(%arg0: i32) -> (i32, i32) {
    %c0_i32 = arith.constant 0 : i32
    %c0_i32_0 = arith.constant 0 : i32
    %c0_i32_1 = arith.constant 0 : i32
    return %c0_i32, %c0_i32_0 : i32, i32
  }
  func.func @transform_2(%arg0: i32) -> (i32, i32) {
    %c0_i32 = arith.constant 0 : i32
    %c0_i32_0 = arith.constant 0 : i32
    %c0_i32_1 = arith.constant 0 : i32
    return %c0_i32, %c0_i32_0 : i32, i32
  }
  func.func @transform_3(%arg0: i32) -> (i32, i32) {
    %c0_i32 = arith.constant 0 : i32
    %c0_i32_0 = arith.constant 0 : i32
    %c0_i32_1 = arith.constant 0 : i32
    return %c0_i32, %c0_i32_0 : i32, i32
  }
  func.func @transform_4(%arg0: i32) -> (i32, i32) {
    %c0_i32 = arith.constant 0 : i32
    %c0_i32_0 = arith.constant 0 : i32
    %c0_i32_1 = arith.constant 0 : i32
    return %c0_i32, %c0_i32_0 : i32, i32
  }
  func.func @transform_5(%arg0: i32) -> (i32, i32) {
    %c0_i32 = arith.constant 0 : i32
    %c0_i32_0 = arith.constant 0 : i32
    %c0_i32_1 = arith.constant 0 : i32
    return %c0_i32, %c0_i32_0 : i32, i32
  }
  func.func @transform_6(%arg0: i32) -> (i32, i32) {
    %c0_i32 = arith.constant 0 : i32
    %c0_i32_0 = arith.constant 0 : i32
    %c0_i32_1 = arith.constant 0 : i32
    return %c0_i32, %c0_i32_0 : i32, i32
  }
  func.func @transform_7(%arg0: i32) -> (i32, i32) {
    %c0_i32 = arith.constant 0 : i32
    %c0_i32_0 = arith.constant 0 : i32
    %c0_i32_1 = arith.constant 0 : i32
    return %c0_i32, %c0_i32_0 : i32, i32
  }
  func.func @transform_8(%arg0: i32) -> (i32, i32, i32) {
    %c0_i32 = arith.constant 0 : i32
    %c0_i32_0 = arith.constant 0 : i32
    %c0_i32_1 = arith.constant 0 : i32
    return %arg0, %c0_i32, %c0_i32_0 : i32, i32, i32
  }
}

module attributes {stable_mosaic.version = 11 : i64} {
  func.func @_class_attention_kernel(%arg0: i32, %arg1: memref<1x8x32xf32, #tpu.memory_space<vmem>>, %arg2: memref<32x32xf32, #tpu.memory_space<vmem>>, %arg3: memref<32x32xf32, #tpu.memory_space<vmem>>, %arg4: memref<32x32xf32, #tpu.memory_space<vmem>>, %arg5: memref<32x32xf32, #tpu.memory_space<vmem>>, %arg6: memref<1x32xf32, #tpu.memory_space<vmem>>, %arg7: memref<32x4xf32, #tpu.memory_space<vmem>>, %arg8: memref<4x32xf32, #tpu.memory_space<vmem>>, %arg9: memref<1x8x32xf32, #tpu.memory_space<vmem>>) attributes {dimension_semantics = [#tpu.dimension_semantics<parallel>], iteration_bounds = array<i64: 2>, scalar_prefetch = 0 : i64, scratch_operands = 0 : i64, tpu.core_type = #tpu.core_type<tc>, window_params = [{transform_indices = @transform_0, window_bounds = array<i64: 1, 8, 32>}, {pipeline_mode = #tpu.pipeline_mode<synchronous>, transform_indices = @transform_1, window_bounds = array<i64: 32, 32>}, {pipeline_mode = #tpu.pipeline_mode<synchronous>, transform_indices = @transform_2, window_bounds = array<i64: 32, 32>}, {pipeline_mode = #tpu.pipeline_mode<synchronous>, transform_indices = @transform_3, window_bounds = array<i64: 32, 32>}, {pipeline_mode = #tpu.pipeline_mode<synchronous>, transform_indices = @transform_4, window_bounds = array<i64: 32, 32>}, {pipeline_mode = #tpu.pipeline_mode<synchronous>, transform_indices = @transform_5, window_bounds = array<i64: 1, 32>}, {pipeline_mode = #tpu.pipeline_mode<synchronous>, transform_indices = @transform_6, window_bounds = array<i64: 32, 4>}, {pipeline_mode = #tpu.pipeline_mode<synchronous>, transform_indices = @transform_7, window_bounds = array<i64: 4, 32>}, {transform_indices = @transform_8, window_bounds = array<i64: 1, 8, 32>}]} {
    %c0 = arith.constant 0 : index
    %c0_0 = arith.constant 0 : index
    %c0_1 = arith.constant 0 : index
    %0 = vector.load %arg1[%c0, %c0_0, %c0_1] : memref<1x8x32xf32, #tpu.memory_space<vmem>>, vector<1x8x32xf32>
    %1 = vector.extract_strided_slice %0 {offsets = [0, 0, 0], sizes = [1, 1, 32], strides = [1, 1, 1]} : vector<1x8x32xf32> to vector<1x1x32xf32>
    %2 = vector.shape_cast %1 : vector<1x1x32xf32> to vector<1x32xf32>
    %c0_2 = arith.constant 0 : index
    %c0_3 = arith.constant 0 : index
    %3 = vector.load %arg2[%c0_2, %c0_3] : memref<32x32xf32, #tpu.memory_space<vmem>>, vector<32x32xf32>
    %cst = arith.constant dense<0.000000e+00> : vector<1x32xf32>
    %4 = tpu.matmul %2, %3, %cst {dimension_numbers = #tpu.dot_dimension_numbers<[1], [0], [0], [1], [0, 0, 1, 1], [], []>} : vector<1x32xf32>, vector<32x32xf32>, vector<1x32xf32> -> vector<1x32xf32>
    %5 = vector.shape_cast %0 : vector<1x8x32xf32> to vector<8x32xf32>
    %c0_4 = arith.constant 0 : index
    %c0_5 = arith.constant 0 : index
    %6 = vector.load %arg3[%c0_4, %c0_5] : memref<32x32xf32, #tpu.memory_space<vmem>>, vector<32x32xf32>
    %cst_6 = arith.constant dense<0.000000e+00> : vector<8x32xf32>
    %7 = tpu.matmul %5, %6, %cst_6 {dimension_numbers = #tpu.dot_dimension_numbers<[1], [0], [0], [1], [0, 0, 1, 1], [], []>} : vector<8x32xf32>, vector<32x32xf32>, vector<8x32xf32> -> vector<8x32xf32>
    %8 = vector.shape_cast %7 : vector<8x32xf32> to vector<1x8x32xf32>
    %c0_7 = arith.constant 0 : index
    %c0_8 = arith.constant 0 : index
    %9 = vector.load %arg4[%c0_7, %c0_8] : memref<32x32xf32, #tpu.memory_space<vmem>>, vector<32x32xf32>
    %cst_9 = arith.constant dense<0.000000e+00> : vector<8x32xf32>
    %10 = tpu.matmul %5, %9, %cst_9 {dimension_numbers = #tpu.dot_dimension_numbers<[1], [0], [0], [1], [0, 0, 1, 1], [], []>} : vector<8x32xf32>, vector<32x32xf32>, vector<8x32xf32> -> vector<8x32xf32>
    %11 = vector.shape_cast %10 : vector<8x32xf32> to vector<1x8x32xf32>
    %12 = vector.shape_cast %4 : vector<1x32xf32> to vector<1x1x32xf32>
    %13 = vector.broadcast %12 : vector<1x1x32xf32> to vector<1x8x32xf32>
    %14 = arith.mulf %8, %13 : vector<1x8x32xf32>
    %15 = vector.shape_cast %14 : vector<1x8x32xf32> to vector<8x32xf32>
    %c0_10 = arith.constant 0 : index
    %c0_11 = arith.constant 0 : index
    %16 = vector.load %arg7[%c0_10, %c0_11] : memref<32x4xf32, #tpu.memory_space<vmem>>, vector<32x4xf32>
    %cst_12 = arith.constant dense<0.000000e+00> : vector<8x4xf32>
    %17 = tpu.matmul %15, %16, %cst_12 {dimension_numbers = #tpu.dot_dimension_numbers<[1], [0], [0], [1], [0, 0, 1, 1], [], []>} : vector<8x32xf32>, vector<32x4xf32>, vector<8x4xf32> -> vector<8x4xf32>
    %18 = vector.shape_cast %17 : vector<8x4xf32> to vector<1x8x4xf32>
    %cst_13 = arith.constant dense<0xFF800000> : vector<1x4xf32>
    %19 = vector.multi_reduction <maximumf>, %18, %cst_13 [1] : vector<1x8x4xf32> to vector<1x4xf32>
    %20 = vector.shape_cast %19 : vector<1x4xf32> to vector<1x1x4xf32>
    %21 = vector.broadcast %20 : vector<1x1x4xf32> to vector<1x8x4xf32>
    %22 = arith.subf %18, %21 : vector<1x8x4xf32>
    %23 = math.exp %22 : vector<1x8x4xf32>
    %cst_14 = arith.constant dense<0.000000e+00> : vector<1x4xf32>
    %24 = vector.multi_reduction <add>, %23, %cst_14 [1] : vector<1x8x4xf32> to vector<1x4xf32>
    %25 = vector.shape_cast %24 : vector<1x4xf32> to vector<1x1x4xf32>
    %26 = vector.broadcast %25 : vector<1x1x4xf32> to vector<1x8x4xf32>
    %27 = arith.divf %23, %26 : vector<1x8x4xf32>
    %28 = vector.shape_cast %27 : vector<1x8x4xf32> to vector<8x4xf32>
    %c0_15 = arith.constant 0 : index
    %c0_16 = arith.constant 0 : index
    %29 = vector.load %arg8[%c0_15, %c0_16] : memref<4x32xf32, #tpu.memory_space<vmem>>, vector<4x32xf32>
    %cst_17 = arith.constant dense<0.000000e+00> : vector<8x32xf32>
    %30 = tpu.matmul %28, %29, %cst_17 {dimension_numbers = #tpu.dot_dimension_numbers<[1], [0], [0], [1], [0, 0, 1, 1], [], []>} : vector<8x4xf32>, vector<4x32xf32>, vector<8x32xf32> -> vector<8x32xf32>
    %31 = vector.shape_cast %30 : vector<8x32xf32> to vector<1x8x32xf32>
    %32 = arith.mulf %31, %11 : vector<1x8x32xf32>
    %cst_18 = arith.constant dense<0.000000e+00> : vector<1x32xf32>
    %33 = vector.multi_reduction <add>, %32, %cst_18 [1] : vector<1x8x32xf32> to vector<1x32xf32>
    %c0_19 = arith.constant 0 : index
    %c0_20 = arith.constant 0 : index
    %34 = vector.load %arg5[%c0_19, %c0_20] : memref<32x32xf32, #tpu.memory_space<vmem>>, vector<32x32xf32>
    %cst_21 = arith.constant dense<0.000000e+00> : vector<1x32xf32>
    %35 = tpu.matmul %33, %34, %cst_21 {dimension_numbers = #tpu.dot_dimension_numbers<[1], [0], [0], [1], [0, 0, 1, 1], [], []>} : vector<1x32xf32>, vector<32x32xf32>, vector<1x32xf32> -> vector<1x32xf32>
    %c0_22 = arith.constant 0 : index
    %c0_23 = arith.constant 0 : index
    %36 = vector.load %arg6[%c0_22, %c0_23] : memref<1x32xf32, #tpu.memory_space<vmem>>, vector<1x32xf32>
    %37 = arith.addf %35, %36 : vector<1x32xf32>
    %c0_24 = arith.constant 0 : index
    %c0_25 = arith.constant 0 : index
    %c0_26 = arith.constant 0 : index
    %38 = vector.load %arg9[%c0_24, %c0_25, %c0_26] : memref<1x8x32xf32, #tpu.memory_space<vmem>>, vector<1x8x32xf32>
    tpu.vector_store %arg9[%c0_24, %c0_25, %c0_26], %0 {strides = array<i32>} : memref<1x8x32xf32, #tpu.memory_space<vmem>>, vector<1x8x32xf32>,
    %39 = vector.shape_cast %37 : vector<1x32xf32> to vector<1x1x32xf32>
    %c0_27 = arith.constant 0 : index
    %c0_28 = arith.constant 0 : index
    %c0_29 = arith.constant 0 : index
    %40 = vector.load %arg9[%c0_27, %c0_28, %c0_29] : memref<1x8x32xf32, #tpu.memory_space<vmem>>, vector<1x1x32xf32>
    tpu.vector_store %arg9[%c0_27, %c0_28, %c0_29], %39 {strides = array<i32>} : memref<1x8x32xf32, #tpu.memory_space<vmem>>, vector<1x1x32xf32>,
    return
  }
  func.func @transform_0(%arg0: i32) -> (i32, i32, i32) {
    %c0_i32 = arith.constant 0 : i32
    %c0_i32_0 = arith.constant 0 : i32
    %c0_i32_1 = arith.constant 0 : i32
    return %arg0, %c0_i32, %c0_i32_0 : i32, i32, i32
  }
  func.func @transform_1(%arg0: i32) -> (i32, i32) {
    %c0_i32 = arith.constant 0 : i32
    %c0_i32_0 = arith.constant 0 : i32
    %c0_i32_1 = arith.constant 0 : i32
    return %c0_i32, %c0_i32_0 : i32, i32
  }
  func.func @transform_2(%arg0: i32) -> (i32, i32) {
    %c0_i32 = arith.constant 0 : i32
    %c0_i32_0 = arith.constant 0 : i32
    %c0_i32_1 = arith.constant 0 : i32
    return %c0_i32, %c0_i32_0 : i32, i32
  }
  func.func @transform_3(%arg0: i32) -> (i32, i32) {
    %c0_i32 = arith.constant 0 : i32
    %c0_i32_0 = arith.constant 0 : i32
    %c0_i32_1 = arith.constant 0 : i32
    return %c0_i32, %c0_i32_0 : i32, i32
  }
  func.func @transform_4(%arg0: i32) -> (i32, i32) {
    %c0_i32 = arith.constant 0 : i32
    %c0_i32_0 = arith.constant 0 : i32
    %c0_i32_1 = arith.constant 0 : i32
    return %c0_i32, %c0_i32_0 : i32, i32
  }
  func.func @transform_5(%arg0: i32) -> (i32, i32) {
    %c0_i32 = arith.constant 0 : i32
    %c0_i32_0 = arith.constant 0 : i32
    %c0_i32_1 = arith.constant 0 : i32
    return %c0_i32, %c0_i32_0 : i32, i32
  }
  func.func @transform_6(%arg0: i32) -> (i32, i32) {
    %c0_i32 = arith.constant 0 : i32
    %c0_i32_0 = arith.constant 0 : i32
    %c0_i32_1 = arith.constant 0 : i32
    return %c0_i32, %c0_i32_0 : i32, i32
  }
  func.func @transform_7(%arg0: i32) -> (i32, i32) {
    %c0_i32 = arith.constant 0 : i32
    %c0_i32_0 = arith.constant 0 : i32
    %c0_i32_1 = arith.constant 0 : i32
    return %c0_i32, %c0_i32_0 : i32, i32
  }
  func.func @transform_8(%arg0: i32) -> (i32, i32, i32) {
    %c0_i32 = arith.constant 0 : i32
    %c0_i32_0 = arith.constant 0 : i32
    %c0_i32_1 = arith.constant 0 : i32
    return %arg0, %c0_i32, %c0_i32_0 : i32, i32, i32
  }
}

</mosaic_0001>

<bundles_post_ra>
// kernel: tpu_custom_call.1
= control target key start
LH: loop header
LB: loop body
LE: loop exit
PB: predicated region body
PF: predicated region fallthrough
CT: control target
= control target key end

     0   :  { %13 = vsyncpa [#allocation3], 0  ;;  %s1778_s0 = inlined_call_operand.hbm [shape: f32[2,8,32], index: 0, kind: input, shape index: {}]   ;;  %s1779_s1 = inlined_call_operand.vmem [shape: f32[32,32], index: 1, kind: input, shape index: {}]   ;;  %s1780_s2 = inlined_call_operand.hbm [shape: f32[32,32], index: 2, kind: input, shape index: {}]   ;;  %s1781_s3 = inlined_call_operand.hbm [shape: f32[32,32], index: 3, kind: input, shape index: {}]   ;;  %s1782_s4 = inlined_call_operand.hbm [shape: f32[32,32], index: 4, kind: input, shape index: {}]   ;;  %s1783_s5 = inlined_call_operand.vmem [shape: f32[1,32], index: 5, kind: input, shape index: {}]   ;;  %s1784_s6 = inlined_call_operand.vmem [shape: f32[32,4], index: 6, kind: input, shape index: {}]   ;;  %s1785_s7 = inlined_call_operand.vmem [shape: f32[4,32], index: 7, kind: input, shape index: {}]   ;;  %s1786_s8 = inlined_call_operand.hbm [shape: f32[2,8,32], index: 8, kind: output, shape index: {}]  }
   0x1   :  { %15 = vsyncpa [#allocation3 + $0x1], 0 }
   0x2   :  { %16 = vsyncpa [#allocation6], 0 }
   0x3   :  { %17 = vsyncpa [#allocation9], 0 }
   0x4   :  { %18 = vsyncpa [#allocation4], 0 }
   0x5   :  { %20 = vsyncpa [#allocation4 + $0x1], 0  ;;  %s1447_s27 = smov 0   ;;  %s1449_s28 = smov 0  }
   0x6   :  { %s1451_s29 = smov 0   ;;  %s1453_s30 = smov 0  }
   0x7 LB: > { %1792 = sst [smem:[#allocation15_spill]] %s1378_s27  ;;  %s1468_s9 = sadd.s32 4294967295, %s1390_s30   ;;  %s1390_s30 = sphi %s1453_s30, %s1815_s30   ;;  %s1386_s29 = sphi %s1451_s29, %s1814_s29   ;;  %s1382_s28 = sphi %s1449_s28, %s1813_s28   ;;  %s1378_s27 = sphi %s1447_s27, %s1812_s27  }
   0x8   : > { %s974_s10 = sadd.s32 4294967294, %s1390_s30   ;;  %p46_p0 = scmp.ne.s32.totalorder %s1382_s28, %s1378_s27 }
   0x9   : > { %p1787_p1 = scmp.eq.s32.totalorder %s1468_s9, 0  ;;  %p223_p3 = scmp.eq.s32.totalorder %s974_s10, 1 }
   0xa   : > { %p975_p5 = scmp.ge.s32.totalorder %s1390_s30, 1  ;;  %p230_p7 = scmp.lt.s32.totalorder %s1390_s30, 3 }
   0xb   : > { %p1477_p4 = por %p1787_p1, %p46_p0  ;;  %p1482_p6 = por %p223_p3, %p46_p0 }
   0xc   : > { %p1487_p8 = pnand %p975_p5, %p230_p7  ;;  %s1392_s14 = smov [#allocation5]  }
   0xd   : > { %s1793_s11 = scalar_select %p1477_p4, 1, 0 }
   0xe   : > { %s1794_s12 = scalar_select %p1482_p6, 1, 0 }
   0xf   : > { %s1796_s13 = scalar_select %p1487_p8, 1, 0 }
  0x10   : > { %1795 = sst [smem:[#allocation16_spill]] %s1794_s12  ;;  %s245_s15 = sshll.u32 %s1392_s14, 4  ;;  %s1491_s15 = int_to_ptr.vmem [resolvable:$true] %s245_s15 }
  0x11   : > { %p1132_p9 = pneg %p1487_p8  ;;  %s1393_s17 = smov [#allocation7]  }
  0x12   : > { %s258_s18 = sshll.u32 %s1393_s17, 4  ;;  %s1394_s19 = smov [#allocation8]   ;;  %s1502_s18 = int_to_ptr.vmem [resolvable:$true] %s258_s18 }
  0x13   : > { %p1498_p11 = pnand %p1132_p9, %p1787_p1  ;;  %s1504_s20 = sshll.u32 %s1394_s19, 4  ;;  %s272_s20 = int_to_ptr.vmem [resolvable:$true] %s1504_s20 }
  0x14   : > { %s1202_s23 = scalar_lea.hbm %s1780_s2, 512 }
  0x15   : > { %p1203_p12 = scmp.ne.s32.totalorder %s1780_s2, %s1202_s23  ;;  %p1514_p13 = pneg %p1498_p11 }
  0x16   : > { %p1209_p5 = scmp.lt.u32.totalorder %s1202_s23, %s1780_s2 }
  0x17   : > { %p1205_p0 = pnand %p1514_p13, %p1203_p12 }
  0x19   : > { %p1206_p3 = pneg %p1205_p0 }
  0x1b   : > { %p1211_p7 = pnand %p1209_p5, %p1206_p3 }
  0x1d   : > { %1214 = shalt.err (!%p1211_p7)
}
  0x1e   : > { %s1215_s17 = scalar_lea.vmem %s1491_s15, 512  ;;  %p1223_p2 = scmp.lt.s32.totalorder %s1491_s15, %s1491_s15 }
  0x1f   : > { %p1216_p9 = scmp.ne.s32.totalorder %s1491_s15, %s1215_s17  ;;  %p1224_p6 = scmp.lt.s32.totalorder %s1215_s17, %s1215_s17 }
  0x21   : > { %p1218_p10 = pnand %p1216_p9, %p1514_p13  ;;  %p1225_p12 = por %p1224_p6, %p1223_p2 }
  0x23   : > { %p1219_p1 = pneg %p1218_p10 }
  0x25   : > { %p1226_p0 = pnand %p1225_p12, %p1219_p1 }
  0x27   : > { %1229 = shalt.err (!%p1226_p0)
}
  0x28   : > { %s1395_s19 = smov 128   ;;  %s1396_s21 = smov 8  }
  0x29   : > { %1135 = dma.hbm_to_vmem [thread:$0]  (!%p1498_p11), %s1780_s2, 512, %s1491_s15, [#allocation6], %s1395_s19, %s1395_s19, %s1396_s21  }
  0x2a   : > { %s1230_s10 = scalar_lea.hbm %s1781_s3, 512 }
  0x2b   : > { %p1231_p1 = scmp.ne.s32.totalorder %s1781_s3, %s1230_s10  ;;  %p1237_p10 = scmp.lt.u32.totalorder %s1230_s10, %s1781_s3 }
  0x2d   : > { %p1233_p2 = pnand %p1231_p1, %p1514_p13 }
  0x2f   : > { %p1234_p6 = pneg %p1233_p2 }
  0x31   : > { %p1239_p3 = pnand %p1237_p10, %p1234_p6 }
  0x33   : > { %1242 = shalt.err (!%p1239_p3)
}
  0x34   : > { %s1243_s15 = scalar_lea.vmem %s1502_s18, 512  ;;  %p1251_p12 = scmp.lt.s32.totalorder %s1502_s18, %s1502_s18 }
  0x35   : > { %p1244_p5 = scmp.ne.s32.totalorder %s1502_s18, %s1243_s15  ;;  %p1252_p0 = scmp.lt.s32.totalorder %s1243_s15, %s1243_s15 }
  0x37   : > { %p1246_p7 = pnand %p1244_p5, %p1514_p13  ;;  %p1253_p1 = por %p1252_p0, %p1251_p12 }
  0x39   : > { %p1247_p9 = pneg %p1246_p7 }
  0x3b   : > { %p1254_p2 = pnand %p1253_p1, %p1247_p9 }
  0x3d   : > { %1257 = shalt.err (!%p1254_p2)
}
  0x3e   : > { %1138 = dma.hbm_to_vmem [thread:$0]  (!%p1498_p11), %s1781_s3, 512, %s1502_s18, [#allocation6], %s1395_s19, %s1395_s19, %s1396_s21  }
  0x3f   : > { %s1258_s24 = scalar_lea.hbm %s1782_s4, 512 }
  0x40   : > { %p1259_p6 = scmp.ne.s32.totalorder %s1782_s4, %s1258_s24  ;;  %p1265_p5 = scmp.lt.u32.totalorder %s1258_s24, %s1782_s4 }
  0x42   : > { %p1261_p10 = pnand %p1259_p6, %p1514_p13 }
  0x44   : > { %p1262_p3 = pneg %p1261_p10 }
  0x46   : > { %p1267_p7 = pnand %p1265_p5, %p1262_p3 }
  0x48   : > { %1270 = shalt.err (!%p1267_p7)
}
  0x49   : > { %s1271_s15 = scalar_lea.vmem %s272_s20, 512  ;;  %p1279_p1 = scmp.lt.s32.totalorder %s272_s20, %s272_s20 }
  0x4a   : > { %p1272_p9 = scmp.ne.s32.totalorder %s272_s20, %s1271_s15  ;;  %p1280_p2 = scmp.lt.s32.totalorder %s1271_s15, %s1271_s15 }
  0x4c   : > { %p1274_p12 = pnand %p1272_p9, %p1514_p13  ;;  %p1281_p4 = por %p1280_p2, %p1279_p1 }
  0x4e   : > { %p1275_p0 = pneg %p1274_p12 }
  0x50   : > { %p1282_p8 = pnand %p1281_p4, %p1275_p0 }
  0x52   : > { %1285 = shalt.err (!%p1282_p8)
}
  0x53   : > { %1141 = dma.hbm_to_vmem [thread:$0]  (!%p1498_p11), %s1782_s4, 512, %s272_s20, [#allocation9], %s1395_s19, %s1395_s19, %s1396_s21  }
  0x54   : > { %s1587_s26 = sadd.s32 1, %s1390_s30   ;;  %s33_s12 = sadd.s32 1, %s1386_s29 }
  0x55   : > { %s30_s16 = ssub.s32 %s1390_s30, %s1587_s26  ;;  %p40_p8 = scmp.ne.s32.totalorder %s1386_s29, %s1382_s28 }
  0x56   : > { %p31_p4 = scmp.eq.s32.totalorder %s30_s16, 0  ;;  %p41_p13 = scmp.eq.s32.totalorder %s1390_s30, 0 }
  0x57   : > { %p1153_p6 = scmp.lt.s32.totalorder %s1390_s30, 2  ;;  %p1799_p3 = scmp.eq.s32.totalorder %s1468_s9, 1 }
  0x58   : > { %s1597_s22 = scalar_select %p31_p4, %s1386_s29, %s33_s12  }
  0x59   : > { %p42_p10 = por %p41_p13, %p40_p8  ;;  %p1601_p5 = por %p1799_p3, %p40_p8 }
  0x5a   : > { %s294_s24 = sand.u32 1, %s1386_s29   ;;  %s981_s25 = sshll.u32 %s1390_s30, 7 }
  0x5b   : > { %s980_s20 = sshll.u32 %s294_s24, 3  ;;  %s1610_s10 = scalar_lea.hbm %s1778_s0, %s981_s25 }
  0x5c   : > { %s298_s14 = scalar_lea.vmem [#allocation2], %s980_s20  ;;  %p1612_p11 = pnand %p1153_p6, %p42_p10 }
  0x5d   : > { %s305_s17 = sshll.u32 %s298_s14, 4  ;;  %s295_s18 = scalar_lea.sflag [#allocation3], %s294_s24  ;;  %s1616_s17 = int_to_ptr.vmem [resolvable:$true] %s305_s17 }
  0x5e   : > { %s1286_s27 = scalar_lea.hbm %s1610_s10, 128  ;;  %p1288_p9 = pneg %p1612_p11 }
  0x5f   : > { %p1287_p7 = scmp.ne.s32.totalorder %s1610_s10, %s1286_s27  ;;  %s1291_s25 = scalar_lea.hbm %s1778_s0, 256 }
  0x60   : > { %p1292_p1 = scmp.lt.u32.totalorder %s1610_s10, %s1778_s0  ;;  %p1293_p2 = scmp.lt.u32.totalorder %s1291_s25, %s1286_s27 }
  0x61   : > { %p1289_p12 = pnand %p1288_p9, %p1287_p7  ;;  %p1295_p8 = scmp.lt.u32.totalorder %s1286_s27, %s1610_s10 }
  0x62   : > { %p1294_p4 = por %p1293_p2, %p1292_p1 }
  0x63   : > { %p1290_p0 = pneg %p1289_p12 }
  0x64   : > { %p1296_p13 = por %p1295_p8, %p1294_p4 }
  0x66   : > { %p1297_p6 = pnand %p1296_p13, %p1290_p0 }
  0x68   : > { %1300 = shalt.err (!%p1297_p6)
}
  0x69   : > { %s1301_s24 = scalar_lea.vmem %s1616_s17, 128  ;;  %s1397_s21 = smov [#allocation2]  }
  0x6a   : > { %p1302_p10 = scmp.ne.s32.totalorder %s1616_s17, %s1301_s24  ;;  %s1306_s14 = sshll.u32 %s1397_s21, 4  ;;  %s1307_s14 = int_to_ptr.vmem [resolvable:$false] %s1306_s14 }
  0x6b   : > { %s1308_s16 = scalar_lea.vmem %s1307_s14, 256  ;;  %p1309_p12 = scmp.lt.s32.totalorder %s1616_s17, %s1307_s14 }
  0x6c   : > { %p1304_p3 = pnand %p1302_p10, %p1288_p9  ;;  %p1310_p1 = scmp.lt.s32.totalorder %s1308_s16, %s1301_s24 }
  0x6e   : > { %p1305_p7 = pneg %p1304_p3  ;;  %p1311_p2 = por %p1310_p1, %p1309_p12 }
  0x70   : > { %p1312_p4 = pnand %p1311_p2, %p1305_p7 }
  0x72   : > { %1315 = shalt.err (!%p1312_p4)
}
  0x73   : > { %1145 = dma.hbm_to_vmem [thread:$0]  (!%p1612_p11), %s1610_s10, 128, %s1616_s17, %s295_s18  }
  0x74   : > { %p1802_p0 = scmp.ne.s32.totalorder %s1796_s13, 0 }
  0x75   : > { %s1646_s27 = sand.u32 (!%p1802_p0), 1, %s1382_s28   ;;  %p1803_p9 = scmp.ne.s32.totalorder (!%p1802_p0), %s1793_s11, 0 }
  0x76   : > { %314 = sbr.rel (%p1802_p0) target bundleno = 1079 (0x437), region = 52  ;;  %s983_s12 = sshll.u32 (!%p1802_p0), %s1646_s27, 3 }
  0x77   : > { %s317_s25 = scalar_lea.sflag (!%p1802_p0), [#allocation3], %s1646_s27  ;;  %s320_s20 = scalar_lea.vmem (!%p1802_p0), [#allocation2], %s983_s12 }
  0x7d   : > { %1361 = dma.done.wait (%p1803_p9), %s317_s25, 128  }
  0x7e   : > { %1363 = vsyncadd (%p1803_p9), %s317_s25, 4294967168  ;;  %p1804_p8 = scmp.eq.s32.totalorder %s1468_s9, 0 }
  0x80   : > { %1365 = dma.done.wait (%p1804_p8), [#allocation6], 1024   ;;  %p1805_p11 = pmov %p1804_p8 }
  0x81   : > { %p1806_p13 = pmov %p1804_p8 }
  0x82   : > { %1367 = vsyncadd (%p1805_p11), [#allocation6], 4294966272 }
  0x83   : > { %1369 = dma.done.wait (%p1806_p13), [#allocation9], 512   ;;  %p1807_p6 = pmov %p1804_p8 }
  0x84   : > { %v1398_v0 = vmov 0.0|0.0   ;;  %vm1399_vm0 = vmmov 0   ;;  %v1400_v1 = vmov 0.0   ;;  %v366_v2 = vld [vmem:[%s1779_s1] sm:$0xff]  ;;  %v367_v3 = vld [vmem:[%s1779_s1 + $0x8] sm:$0xff]  ;;  %v444_v4 = vld [vmem:[#allocation5] sm:$0xff]  ;;  %v592_v21 = vlaneseq }
  0x85   : > { %1371 = vsyncadd (%p1807_p6), [#allocation9], 4294966784  ;;  %1086 = vmatprep.subr.bf16.mxu0 %v1398_v0  ;;  %1092 = vmatprep.subr.bf16.mxu1 %v1398_v0  ;;  %v1087_v5 = vpack.c.bf16 %v367_v3, %v366_v2  ;;  %v445_v6 = vld [vmem:[#allocation5 + $0x8] sm:$0xff]  ;;  %v368_v7 = vld [vmem:[%s1779_s1 + $0x10] sm:$0xff]  ;;  %vm370_vm1 = vcmask 261120   ;;  %s1680_s21 = scalar_lea.vmem [#allocation10], %s983_s12 }
  0x86   : > { %1034 = vmatprep.mubr.msk.f32.mxu0 %vm1399_vm0, %v1400_v1  ;;  %1045 = vmatprep.mubr.msk.f32.mxu1 %vm1399_vm0, %v1400_v1  ;;  %v369_v8 = vld [vmem:[%s1779_s1 + $0x18] sm:$0xff]  ;;  %v1093_v9 = vpack.c.bf16 %v445_v6, %v444_v4  ;;  %v446_v10 = vld [vmem:[#allocation5 + $0x10] sm:$0xff]  ;;  %v447_v11 = vld [vmem:[#allocation5 + $0x18] sm:$0xff]  ;;  %v593_v22 = vshrl.u32 %v592_v21, 7  ;;  %vm698_vm2 = vcmask 1043456   ;;  %vm674_vm3 = vcmask 31744  }
  0x87   : > { %v365_v12 = vld [vmem:[%s320_s20] sm:$0xff]  ;;  %1088 = vmatpush3.bf16.msra.mxu0 %v1087_v5  ;;  %v1090_v13 = vpack.c.bf16 %v369_v8, %v368_v7  ;;  %v1096_v14 = vpack.c.bf16 %v447_v11, %v446_v10  ;;  %v599_v18 = vld [vmem:[%s1784_s6 + $0x10] sm:$0xff]  ;;  %v600_v19 = vld [vmem:[%s1784_s6 + $0x18] sm:$0xff]  ;;  %s996_s24 = sshll.u32 %s1468_s9, 7  ;;  %s875_s14 = sshll.u32 %s1680_s21, 4  ;;  %vm859_vm4 = vcmask 253952   ;;  %s1735_s14 = int_to_ptr.vmem [resolvable:$true] %s875_s14 }
  0x88   : > { %858 = vst.msk [vmem:[%s1680_s21] sm:$0xff] %vm370_vm1, %v365_v12  ;;  %1094 = vmatpush3.bf16.msra.mxu1 %v1093_v9  ;;  %1089 = vmatprep.subr.bf16.mxu0 %v1398_v0  ;;  %v597_v15 = vld [vmem:[%s1784_s6] sm:$0xff]  ;;  %v598_v16 = vld [vmem:[%s1784_s6 + $0x8] sm:$0xff]  ;;  %v1108_v20 = vpack.c.bf16 %v600_v19, %v599_v18  ;;  %v594_v23 = vsub.s32 0, %v593_v22  ;;  %v518_v30 = vld [vmem:[#allocation7] sm:$0xff]  ;;  %s1733_s20 = scalar_lea.hbm %s1786_s8, %s996_s24  ;;  %s862_s12 = scalar_lea.sflag [#allocation4], %s1646_s27 }
  0x89   : > { %1095 = vmatprep.subr.bf16.mxu1 %v1398_v0  ;;  %v1105_v17 = vpack.c.bf16 %v598_v16, %v597_v15  ;;  %v519_v31 = vld [vmem:[#allocation7 + $0x8] sm:$0xff]  ;;  %v520_v33 = vld [vmem:[#allocation7 + $0x10] sm:$0xff]  ;;  %v521_v34 = vld [vmem:[#allocation7 + $0x18] sm:$0xff]  ;;  %s1316_s11 = scalar_lea.vmem %s1735_s14, 128  ;;  %s1401_s9 = smov [#allocation10]  }
  0x8a   : > { %v1099_v32 = vpack.c.bf16 %v519_v31, %v518_v30  ;;  %v1102_v35 = vpack.c.bf16 %v521_v34, %v520_v33  ;;  %v694_v36 = vld [vmem:[%s1785_s7] sm:$0xf]  ;;  %v780_v60 = vld [vmem:[#allocation8] sm:$0xff]  ;;  %v781_v61 = vld [vmem:[#allocation8 + $0x8] sm:$0xff]  ;;  %p1317_p10 = scmp.ne.s32.totalorder %s1735_s14, %s1316_s11  ;;  %s1320_s13 = sshll.u32 %s1401_s9, 4  ;;  %s1321_s13 = int_to_ptr.vmem [resolvable:$false] %s1320_s13 }
  0x8b   : > { %1091 = vmatpush3.bf16.msra.mxu0 %v1090_v13  ;;  %v1111_v62 = vpack.c.bf16 %v781_v61, %v780_v60  ;;  %v782_v63 = vld [vmem:[#allocation8 + $0x10] sm:$0xff]  ;;  %s1322_s10 = scalar_lea.vmem %s1321_s13, 256  ;;  %p1323_p12 = scmp.lt.s32.totalorder %s1735_s14, %s1321_s13 }
  0x8c   : > { %1097 = vmatpush3.bf16.msra.mxu1 %v1096_v14  ;;  %1098 = vmatprep.subr.bf16.mxu0 %v1398_v0  ;;  %p1318_p3 = pnand %p1317_p10, %p1601_p5  ;;  %p1324_p1 = scmp.lt.s32.totalorder %s1322_s10, %s1316_s11 }
  0x8d   : > { %1104 = vmatprep.subr.bf16.mxu1 %v1398_v0 }
  0x8e   : > { %1035 = vmatmul.mubr.msk.f32.vlgmr.msra.gmra.mrb[0].mxu0 %vm370_vm1, %v365_v12  ;;  %p1319_p7 = pneg %p1318_p3  ;;  %p1325_p2 = por %p1324_p1, %p1323_p12 }
  0x8f   : > { %1046 = vmatmul.mubr.msk.f32.vlgmr.msra.gmra.mrb[0].mxu1 %vm370_vm1, %v365_v12  ;;  %1056 = vmatprep.mubr.msk.f32.mxu0 %vm1399_vm0, %v1400_v1 }
  0x90   : > { %1106 = vmatpush3.bf16.msra.mxu1 %v1105_v17  ;;  %1067 = vmatprep.mubr.msk.f32.mxu1 %vm1399_vm0, %v1400_v1  ;;  %p1326_p4 = pnand %p1325_p2, %p1319_p7 }
  0x91   : > { %1107 = vmatprep.subr.bf16.mxu1 %v1398_v0  ;;  %1100 = vmatpush3.bf16.msra.mxu0 %v1099_v32 }
  0x92   : > { %1101 = vmatprep.subr.bf16.mxu0 %v1398_v0 }
  0x94   : > { %1109 = vmatpush3.bf16.msra.mxu1 %v1108_v20 }
  0x95   : > { %1110 = vmatprep.subr.bf16.mxu1 %v1398_v0  ;;  %1103 = vmatpush3.bf16.msra.mxu0 %v1102_v35 }
  0x96   : > { %1070 = vmatprep.subr.mxu0 %v1400_v1 }
  0x98   : > { %1057 = vmatmul.mubr.msk.f32.vlgmr.msra.gmra.mrb[2].mxu0 %vm370_vm1, %v365_v12  ;;  %v784_v12 = vld [vmem:[%s1783_s5] sm:$0x1] }
  0x99   : > { %1071 = vmatpush3.msk.msra.mxu0 %vm698_vm2, %v694_v36  ;;  %1072 = vmatprep.mubr.msk.f32.mxu0 %vm1399_vm0, %v1400_v1 }
 0x161   : > { %v440_v24 = vpop.f32.mrb[0].mxu0 }
 0x162   : > { %v595_v25 = vrot.slane %v440_v24, %v594_v23  ;;  %v1036_v26 = vpop.f32.mrb[1].mxu0  ;;  %v514_v27 = vpop.f32.mrb[0].mxu1 }
 0x163   : > { %v1047_v28 = vpop.f32.mrb[1].mxu1 }
 0x164   : > { %v596_v29 = vmul.f32 %v595_v25, %v514_v27 }
 0x166   : > { %1068 = vmatmul.mubr.msk.f32.vlgmr.msra.gmra.mrb[2].mxu1 %vm370_vm1, %v596_v29 }
 0x167   : > { %1083 = vmatprep.mubr.msk.f32.mxu1 %vm1399_vm0, %v1400_v1  ;;  %1112 = vmatpush3.bf16.msra.mxu1 %v1111_v62  ;;  %v783_v1 = vld [vmem:[#allocation8 + $0x18] sm:$0xff] }
 0x168   : > { %1113 = vmatprep.subr.bf16.mxu1 %v1398_v0  ;;  %v1114_v2 = vpack.c.bf16 %v783_v1, %v782_v63 }
 0x16b   : > { %v588_v58 = vpop.f32.mrb[2].mxu0  ;;  %1115 = vmatpush3.bf16.msra.mxu1 %v1114_v2 }
 0x16c   : > { %v1058_v59 = vpop.f32.mrb[3].mxu0 }
 0x239   : > { %v670_v37 = vpop.f32.mrb[2].mxu1 }
 0x23a   : > { %v675_v38 = vsel %vm674_vm3, %v670_v37, -inf  ;;  %v1069_v39 = vpop.f32.mrb[3].mxu1 }
 0x23b   : > { %v676_v40 = vrot.slane %v675_v38, 4 }
 0x23d   : > { %v677_v41 = vmax.f32 %v675_v38, %v676_v40 }
 0x23f   : > { %v678_v42 = vrot.slane %v677_v41, 2 }
 0x241   : > { %v679_v43 = vmax.f32 %v677_v41, %v678_v42 }
 0x243   : > { %v680_v44 = vrot.slane %v679_v43, 1 }
 0x245   : > { %v681_v45 = vmax.f32 %v679_v43, %v680_v44 }
 0x247   : > { %v682_v46 = vsub.f32 %v670_v37, %v681_v45 }
 0x249   : > { %v683_v47 = vmul.f32 1.442695, %v682_v46 }
 0x24b   : > { %1198 = vpow2.f32 %v683_v47 }
 0x255   : > { %v1199_v48 = vpop.eup %1198 }
 0x256   : > { %v685_v49 = vsel %vm674_vm3, %v1199_v48, 0.0 }
 0x257   : > { %v686_v50 = vrot.slane %v685_v49, 4 }
 0x259   : > { %v687_v51 = vadd.f32 %v686_v50, %v685_v49 }
 0x25b   : > { %v688_v52 = vrot.slane %v687_v51, 2 }
 0x25d   : > { %v689_v53 = vadd.f32 %v688_v52, %v687_v51 }
 0x25f   : > { %v690_v54 = vrot.slane %v689_v53, 1 }
 0x261   : > { %v691_v55 = vadd.f32 %v690_v54, %v689_v53 }
 0x263   : > { %1200 = vrcp.f32 %v691_v55 }
 0x26d   : > { %v1201_v56 = vpop.eup %1200 }
 0x26e   : > { %v693_v57 = vmul.f32 %v1201_v56, %v1199_v48 }
 0x270   : > { %1073 = vmatmul.mubr.msk.f32.vlgmr.msra.gmra.mrb[4].mxu0 %vm674_vm3, %v693_v57 }
 0x343   : > { %v768_v3 = vpop.f32.mrb[4].mxu0 }
 0x344   : > { %v772_v4 = vmul.f32 %v768_v3, %v588_v58  ;;  %v1074_v5 = vpop.f32.mrb[5].mxu0 }
 0x346   : > { %v773_v6 = vsel %vm370_vm1, %v772_v4, 0.0 }
 0x347   : > { %v774_v7 = vrot.slane %v773_v6, 4 }
 0x349   : > { %v775_v8 = vadd.f32 %v774_v7, %v773_v6 }
 0x34b   : > { %v776_v9 = vrot.slane %v775_v8, 2 }
 0x34d   : > { %v777_v10 = vadd.f32 %v776_v9, %v775_v8 }
 0x34f   : > { %v778_v11 = vrot.slane %v777_v10, 1 }
 0x351   : > { %v779_v0 = vadd.f32 %v778_v11, %v777_v10 }
 0x353   : > { %1084 = vmatmul.mubr.msk.f32.vlgmr.msra.gmra.mrb[4].mxu1 %vm370_vm1, %v779_v0 }
 0x426   : > { %v854_v13 = vpop.f32.mrb[4].mxu1 }
 0x427   : > { %v855_v14 = vadd.f32 %v854_v13, %v784_v12  ;;  %v1085_v15 = vpop.f32.mrb[5].mxu1 }
 0x429   : > { %860 = vst.msk [vmem:[%s1680_s21] sm:$0x1] %vm859_vm4, %v855_v14 }
 0x42a   : > { %1329 = shalt.err (!%p1326_p4)
}
 0x42b   : > { %s1330_s27 = scalar_lea.hbm %s1733_s20, 128  ;;  %s1334_s15 = scalar_lea.hbm %s1786_s8, 256 }
 0x42c   : > { %p1331_p0 = scmp.ne.s32.totalorder %s1733_s20, %s1330_s27  ;;  %p1335_p11 = scmp.lt.u32.totalorder %s1733_s20, %s1786_s8 }
 0x42d   : > { %p1336_p13 = scmp.lt.u32.totalorder %s1334_s15, %s1330_s27  ;;  %p1338_p10 = scmp.lt.u32.totalorder %s1330_s27, %s1733_s20 }
 0x42e   : > { %p1332_p9 = pnand %p1331_p0, %p1601_p5 }
 0x42f   : > { %p1337_p6 = por %p1336_p13, %p1335_p11 }
 0x430   : > { %p1333_p8 = pneg %p1332_p9 }
 0x431   : > { %p1339_p3 = por %p1338_p10, %p1337_p6 }
 0x433   : > { %p1340_p7 = pnand %p1339_p3, %p1333_p8 }
 0x435   : > { %1343 = shalt.err (!%p1340_p7)
}
 0x436   : > { %1130 = dma.vmem_to_hbm [thread:$0]  (%p1601_p5), %s1735_s14, 128, %s1733_s20, %s862_s12  }
 0x437 PF: > { %s1808_s24 = sld [smem:[#allocation15_spill]]  ;;  %s1809_s16 = sld [smem:[#allocation16_spill]] }
 0x438   : > { %p1811_p1 = scmp.ge.s32.totalorder %s1390_s30, 2 }
 0x43d   : > { %s887_s25 = sand.u32 1, %s1808_s24   ;;  %p1810_p12 = scmp.ne.s32.totalorder %s1809_s16, 0 }
 0x43e   : > { %s888_s11 = scalar_lea.sflag [#allocation4], %s887_s25 }
 0x43f   : > { %p1147_p2 = pnand %p1811_p1, %p1810_p12 }
 0x441   : > { %1373 = dma.done.wait (!%p1147_p2), %s888_s11, 128  }
 0x442   : > { %1375 = vsyncadd (!%p1147_p2), %s888_s11, 4294967168  ;;  %p23_p4 = scmp.ge.s32.totalorder %s1587_s26, 4   ;;  %s1812_s27 = smov %s1382_s28 }
 0x443   : > { %s1813_s28 = smov %s1386_s29  ;;  %s1814_s29 = smov %s1597_s22 }
 0x444   : > { %s1815_s30 = smov %s1587_s26  ;;  %25 = sbr.rel (!%p23_p4) target bundleno = 7 (0x7), region = 109 }
 0x44b   :  { %893 = vsyncpa [#allocation3], 1 }
 0x44c   :  { %895 = vsyncpa [#allocation3 + $0x1], 1 }
 0x44d   :  { %896 = vsyncpa [#allocation6], 1 }
 0x44e   :  { %897 = vsyncpa [#allocation9], 1 }
 0x44f   :  { %898 = vsyncpa [#allocation4], 1 }
 0x450   :  { %900 = vsyncpa [#allocation4 + $0x1], 1 }

// kernel: tpu_custom_call.1
= control target key start
LH: loop header
LB: loop body
LE: loop exit
PB: predicated region body
PF: predicated region fallthrough
CT: control target
= control target key end

     0   :  { %13 = vsyncpa [#allocation3], 0  ;;  %s1778_s0 = inlined_call_operand.hbm [shape: f32[2,8,32], index: 0, kind: input, shape index: {}]   ;;  %s1779_s1 = inlined_call_operand.vmem [shape: f32[32,32], index: 1, kind: input, shape index: {}]   ;;  %s1780_s2 = inlined_call_operand.hbm [shape: f32[32,32], index: 2, kind: input, shape index: {}]   ;;  %s1781_s3 = inlined_call_operand.hbm [shape: f32[32,32], index: 3, kind: input, shape index: {}]   ;;  %s1782_s4 = inlined_call_operand.hbm [shape: f32[32,32], index: 4, kind: input, shape index: {}]   ;;  %s1783_s5 = inlined_call_operand.vmem [shape: f32[1,32], index: 5, kind: input, shape index: {}]   ;;  %s1784_s6 = inlined_call_operand.vmem [shape: f32[32,4], index: 6, kind: input, shape index: {}]   ;;  %s1785_s7 = inlined_call_operand.vmem [shape: f32[4,32], index: 7, kind: input, shape index: {}]   ;;  %s1786_s8 = inlined_call_operand.hbm [shape: f32[2,8,32], index: 8, kind: output, shape index: {}]  }
   0x1   :  { %15 = vsyncpa [#allocation3 + $0x1], 0 }
   0x2   :  { %16 = vsyncpa [#allocation6], 0 }
   0x3   :  { %17 = vsyncpa [#allocation9], 0 }
   0x4   :  { %18 = vsyncpa [#allocation4], 0 }
   0x5   :  { %20 = vsyncpa [#allocation4 + $0x1], 0  ;;  %s1447_s27 = smov 0   ;;  %s1449_s28 = smov 0  }
   0x6   :  { %s1451_s29 = smov 0   ;;  %s1453_s30 = smov 0  }
   0x7 LB: > { %1792 = sst [smem:[#allocation15_spill]] %s1378_s27  ;;  %s1468_s9 = sadd.s32 4294967295, %s1390_s30   ;;  %s1390_s30 = sphi %s1453_s30, %s1815_s30   ;;  %s1386_s29 = sphi %s1451_s29, %s1814_s29   ;;  %s1382_s28 = sphi %s1449_s28, %s1813_s28   ;;  %s1378_s27 = sphi %s1447_s27, %s1812_s27  }
   0x8   : > { %s974_s10 = sadd.s32 4294967294, %s1390_s30   ;;  %p46_p0 = scmp.ne.s32.totalorder %s1382_s28, %s1378_s27 }
   0x9   : > { %p1787_p1 = scmp.eq.s32.totalorder %s1468_s9, 0  ;;  %p223_p3 = scmp.eq.s32.totalorder %s974_s10, 1 }
   0xa   : > { %p975_p5 = scmp.ge.s32.totalorder %s1390_s30, 1  ;;  %p230_p7 = scmp.lt.s32.totalorder %s1390_s30, 3 }
   0xb   : > { %p1477_p4 = por %p1787_p1, %p46_p0  ;;  %p1482_p6 = por %p223_p3, %p46_p0 }
   0xc   : > { %p1487_p8 = pnand %p975_p5, %p230_p7  ;;  %s1392_s14 = smov [#allocation5]  }
   0xd   : > { %s1793_s11 = scalar_select %p1477_p4, 1, 0 }
   0xe   : > { %s1794_s12 = scalar_select %p1482_p6, 1, 0 }
   0xf   : > { %s1796_s13 = scalar_select %p1487_p8, 1, 0 }
  0x10   : > { %1795 = sst [smem:[#allocation16_spill]] %s1794_s12  ;;  %s245_s15 = sshll.u32 %s1392_s14, 4  ;;  %s1491_s15 = int_to_ptr.vmem [resolvable:$true] %s245_s15 }
  0x11   : > { %p1132_p9 = pneg %p1487_p8  ;;  %s1393_s17 = smov [#allocation7]  }
  0x12   : > { %s258_s18 = sshll.u32 %s1393_s17, 4  ;;  %s1394_s19 = smov [#allocation8]   ;;  %s1502_s18 = int_to_ptr.vmem [resolvable:$true] %s258_s18 }
  0x13   : > { %p1498_p11 = pnand %p1132_p9, %p1787_p1  ;;  %s1504_s20 = sshll.u32 %s1394_s19, 4  ;;  %s272_s20 = int_to_ptr.vmem [resolvable:$true] %s1504_s20 }
  0x14   : > { %s1202_s23 = scalar_lea.hbm %s1780_s2, 512 }
  0x15   : > { %p1203_p12 = scmp.ne.s32.totalorder %s1780_s2, %s1202_s23  ;;  %p1514_p13 = pneg %p1498_p11 }
  0x16   : > { %p1209_p5 = scmp.lt.u32.totalorder %s1202_s23, %s1780_s2 }
  0x17   : > { %p1205_p0 = pnand %p1514_p13, %p1203_p12 }
  0x19   : > { %p1206_p3 = pneg %p1205_p0 }
  0x1b   : > { %p1211_p7 = pnand %p1209_p5, %p1206_p3 }
  0x1d   : > { %1214 = shalt.err (!%p1211_p7)
}
  0x1e   : > { %s1215_s17 = scalar_lea.vmem %s1491_s15, 512  ;;  %p1223_p2 = scmp.lt.s32.totalorder %s1491_s15, %s1491_s15 }
  0x1f   : > { %p1216_p9 = scmp.ne.s32.totalorder %s1491_s15, %s1215_s17  ;;  %p1224_p6 = scmp.lt.s32.totalorder %s1215_s17, %s1215_s17 }
  0x21   : > { %p1218_p10 = pnand %p1216_p9, %p1514_p13  ;;  %p1225_p12 = por %p1224_p6, %p1223_p2 }
  0x23   : > { %p1219_p1 = pneg %p1218_p10 }
  0x25   : > { %p1226_p0 = pnand %p1225_p12, %p1219_p1 }
  0x27   : > { %1229 = shalt.err (!%p1226_p0)
}
  0x28   : > { %s1395_s19 = smov 128   ;;  %s1396_s21 = smov 8  }
  0x29   : > { %1135 = dma.hbm_to_vmem [thread:$0]  (!%p1498_p11), %s1780_s2, 512, %s1491_s15, [#allocation6], %s1395_s19, %s1395_s19, %s1396_s21  }
  0x2a   : > { %s1230_s10 = scalar_lea.hbm %s1781_s3, 512 }
  0x2b   : > { %p1231_p1 = scmp.ne.s32.totalorder %s1781_s3, %s1230_s10  ;;  %p1237_p10 = scmp.lt.u32.totalorder %s1230_s10, %s1781_s3 }
  0x2d   : > { %p1233_p2 = pnand %p1231_p1, %p1514_p13 }
  0x2f   : > { %p1234_p6 = pneg %p1233_p2 }
  0x31   : > { %p1239_p3 = pnand %p1237_p10, %p1234_p6 }
  0x33   : > { %1242 = shalt.err (!%p1239_p3)
}
  0x34   : > { %s1243_s15 = scalar_lea.vmem %s1502_s18, 512  ;;  %p1251_p12 = scmp.lt.s32.totalorder %s1502_s18, %s1502_s18 }
  0x35   : > { %p1244_p5 = scmp.ne.s32.totalorder %s1502_s18, %s1243_s15  ;;  %p1252_p0 = scmp.lt.s32.totalorder %s1243_s15, %s1243_s15 }
  0x37   : > { %p1246_p7 = pnand %p1244_p5, %p1514_p13  ;;  %p1253_p1 = por %p1252_p0, %p1251_p12 }
  0x39   : > { %p1247_p9 = pneg %p1246_p7 }
  0x3b   : > { %p1254_p2 = pnand %p1253_p1, %p1247_p9 }
  0x3d   : > { %1257 = shalt.err (!%p1254_p2)
}
  0x3e   : > { %1138 = dma.hbm_to_vmem [thread:$0]  (!%p1498_p11), %s1781_s3, 512, %s1502_s18, [#allocation6], %s1395_s19, %s1395_s19, %s1396_s21  }
  0x3f   : > { %s1258_s24 = scalar_lea.hbm %s1782_s4, 512 }
  0x40   : > { %p1259_p6 = scmp.ne.s32.totalorder %s1782_s4, %s1258_s24  ;;  %p1265_p5 = scmp.lt.u32.totalorder %s1258_s24, %s1782_s4 }
  0x42   : > { %p1261_p10 = pnand %p1259_p6, %p1514_p13 }
  0x44   : > { %p1262_p3 = pneg %p1261_p10 }
  0x46   : > { %p1267_p7 = pnand %p1265_p5, %p1262_p3 }
  0x48   : > { %1270 = shalt.err (!%p1267_p7)
}
  0x49   : > { %s1271_s15 = scalar_lea.vmem %s272_s20, 512  ;;  %p1279_p1 = scmp.lt.s32.totalorder %s272_s20, %s272_s20 }
  0x4a   : > { %p1272_p9 = scmp.ne.s32.totalorder %s272_s20, %s1271_s15  ;;  %p1280_p2 = scmp.lt.s32.totalorder %s1271_s15, %s1271_s15 }
  0x4c   : > { %p1274_p12 = pnand %p1272_p9, %p1514_p13  ;;  %p1281_p4 = por %p1280_p2, %p1279_p1 }
  0x4e   : > { %p1275_p0 = pneg %p1274_p12 }
  0x50   : > { %p1282_p8 = pnand %p1281_p4, %p1275_p0 }
  0x52   : > { %1285 = shalt.err (!%p1282_p8)
}
  0x53   : > { %1141 = dma.hbm_to_vmem [thread:$0]  (!%p1498_p11), %s1782_s4, 512, %s272_s20, [#allocation9], %s1395_s19, %s1395_s19, %s1396_s21  }
  0x54   : > { %s1587_s26 = sadd.s32 1, %s1390_s30   ;;  %s33_s12 = sadd.s32 1, %s1386_s29 }
  0x55   : > { %s30_s16 = ssub.s32 %s1390_s30, %s1587_s26  ;;  %p40_p8 = scmp.ne.s32.totalorder %s1386_s29, %s1382_s28 }
  0x56   : > { %p31_p4 = scmp.eq.s32.totalorder %s30_s16, 0  ;;  %p41_p13 = scmp.eq.s32.totalorder %s1390_s30, 0 }
  0x57   : > { %p1153_p6 = scmp.lt.s32.totalorder %s1390_s30, 2  ;;  %p1799_p3 = scmp.eq.s32.totalorder %s1468_s9, 1 }
  0x58   : > { %s1597_s22 = scalar_select %p31_p4, %s1386_s29, %s33_s12  }
  0x59   : > { %p42_p10 = por %p41_p13, %p40_p8  ;;  %p1601_p5 = por %p1799_p3, %p40_p8 }
  0x5a   : > { %s294_s24 = sand.u32 1, %s1386_s29   ;;  %s981_s25 = sshll.u32 %s1390_s30, 7 }
  0x5b   : > { %s980_s20 = sshll.u32 %s294_s24, 3  ;;  %s1610_s10 = scalar_lea.hbm %s1778_s0, %s981_s25 }
  0x5c   : > { %s298_s14 = scalar_lea.vmem [#allocation2], %s980_s20  ;;  %p1612_p11 = pnand %p1153_p6, %p42_p10 }
  0x5d   : > { %s305_s17 = sshll.u32 %s298_s14, 4  ;;  %s295_s18 = scalar_lea.sflag [#allocation3], %s294_s24  ;;  %s1616_s17 = int_to_ptr.vmem [resolvable:$true] %s305_s17 }
  0x5e   : > { %s1286_s27 = scalar_lea.hbm %s1610_s10, 128  ;;  %p1288_p9 = pneg %p1612_p11 }
  0x5f   : > { %p1287_p7 = scmp.ne.s32.totalorder %s1610_s10, %s1286_s27  ;;  %s1291_s25 = scalar_lea.hbm %s1778_s0, 256 }
  0x60   : > { %p1292_p1 = scmp.lt.u32.totalorder %s1610_s10, %s1778_s0  ;;  %p1293_p2 = scmp.lt.u32.totalorder %s1291_s25, %s1286_s27 }
  0x61   : > { %p1289_p12 = pnand %p1288_p9, %p1287_p7  ;;  %p1295_p8 = scmp.lt.u32.totalorder %s1286_s27, %s1610_s10 }
  0x62   : > { %p1294_p4 = por %p1293_p2, %p1292_p1 }
  0x63   : > { %p1290_p0 = pneg %p1289_p12 }
  0x64   : > { %p1296_p13 = por %p1295_p8, %p1294_p4 }
  0x66   : > { %p1297_p6 = pnand %p1296_p13, %p1290_p0 }
  0x68   : > { %1300 = shalt.err (!%p1297_p6)
}
  0x69   : > { %s1301_s24 = scalar_lea.vmem %s1616_s17, 128  ;;  %s1397_s21 = smov [#allocation2]  }
  0x6a   : > { %p1302_p10 = scmp.ne.s32.totalorder %s1616_s17, %s1301_s24  ;;  %s1306_s14 = sshll.u32 %s1397_s21, 4  ;;  %s1307_s14 = int_to_ptr.vmem [resolvable:$false] %s1306_s14 }
  0x6b   : > { %s1308_s16 = scalar_lea.vmem %s1307_s14, 256  ;;  %p1309_p12 = scmp.lt.s32.totalorder %s1616_s17, %s1307_s14 }
  0x6c   : > { %p1304_p3 = pnand %p1302_p10, %p1288_p9  ;;  %p1310_p1 = scmp.lt.s32.totalorder %s1308_s16, %s1301_s24 }
  0x6e   : > { %p1305_p7 = pneg %p1304_p3  ;;  %p1311_p2 = por %p1310_p1, %p1309_p12 }
  0x70   : > { %p1312_p4 = pnand %p1311_p2, %p1305_p7 }
  0x72   : > { %1315 = shalt.err (!%p1312_p4)
}
  0x73   : > { %1145 = dma.hbm_to_vmem [thread:$0]  (!%p1612_p11), %s1610_s10, 128, %s1616_s17, %s295_s18  }
  0x74   : > { %p1802_p0 = scmp.ne.s32.totalorder %s1796_s13, 0 }
  0x75   : > { %s1646_s27 = sand.u32 (!%p1802_p0), 1, %s1382_s28   ;;  %p1803_p9 = scmp.ne.s32.totalorder (!%p1802_p0), %s1793_s11, 0 }
  0x76   : > { %314 = sbr.rel (%p1802_p0) target bundleno = 1079 (0x437), region = 52  ;;  %s983_s12 = sshll.u32 (!%p1802_p0), %s1646_s27, 3 }
  0x77   : > { %s317_s25 = scalar_lea.sflag (!%p1802_p0), [#allocation3], %s1646_s27  ;;  %s320_s20 = scalar_lea.vmem (!%p1802_p0), [#allocation2], %s983_s12 }
  0x7d   : > { %1361 = dma.done.wait (%p1803_p9), %s317_s25, 128  }
  0x7e   : > { %1363 = vsyncadd (%p1803_p9), %s317_s25, 4294967168  ;;  %p1804_p8 = scmp.eq.s32.totalorder %s1468_s9, 0 }
  0x80   : > { %1365 = dma.done.wait (%p1804_p8), [#allocation6], 1024   ;;  %p1805_p11 = pmov %p1804_p8 }
  0x81   : > { %p1806_p13 = pmov %p1804_p8 }
  0x82   : > { %1367 = vsyncadd (%p1805_p11), [#allocation6], 4294966272 }
  0x83   : > { %1369 = dma.done.wait (%p1806_p13), [#allocation9], 512   ;;  %p1807_p6 = pmov %p1804_p8 }
  0x84   : > { %v1398_v0 = vmov 0.0|0.0   ;;  %vm1399_vm0 = vmmov 0   ;;  %v1400_v1 = vmov 0.0   ;;  %v366_v2 = vld [vmem:[%s1779_s1] sm:$0xff]  ;;  %v367_v3 = vld [vmem:[%s1779_s1 + $0x8] sm:$0xff]  ;;  %v444_v4 = vld [vmem:[#allocation5] sm:$0xff]  ;;  %v592_v21 = vlaneseq }
  0x85   : > { %1371 = vsyncadd (%p1807_p6), [#allocation9], 4294966784  ;;  %1086 = vmatprep.subr.bf16.mxu0 %v1398_v0  ;;  %1092 = vmatprep.subr.bf16.mxu1 %v1398_v0  ;;  %v1087_v5 = vpack.c.bf16 %v367_v3, %v366_v2  ;;  %v445_v6 = vld [vmem:[#allocation5 + $0x8] sm:$0xff]  ;;  %v368_v7 = vld [vmem:[%s1779_s1 + $0x10] sm:$0xff]  ;;  %vm370_vm1 = vcmask 261120   ;;  %s1680_s21 = scalar_lea.vmem [#allocation10], %s983_s12 }
  0x86   : > { %1034 = vmatprep.mubr.msk.f32.mxu0 %vm1399_vm0, %v1400_v1  ;;  %1045 = vmatprep.mubr.msk.f32.mxu1 %vm1399_vm0, %v1400_v1  ;;  %v369_v8 = vld [vmem:[%s1779_s1 + $0x18] sm:$0xff]  ;;  %v1093_v9 = vpack.c.bf16 %v445_v6, %v444_v4  ;;  %v446_v10 = vld [vmem:[#allocation5 + $0x10] sm:$0xff]  ;;  %v447_v11 = vld [vmem:[#allocation5 + $0x18] sm:$0xff]  ;;  %v593_v22 = vshrl.u32 %v592_v21, 7  ;;  %vm698_vm2 = vcmask 1043456   ;;  %vm674_vm3 = vcmask 31744  }
  0x87   : > { %v365_v12 = vld [vmem:[%s320_s20] sm:$0xff]  ;;  %1088 = vmatpush3.bf16.msra.mxu0 %v1087_v5  ;;  %v1090_v13 = vpack.c.bf16 %v369_v8, %v368_v7  ;;  %v1096_v14 = vpack.c.bf16 %v447_v11, %v446_v10  ;;  %v599_v18 = vld [vmem:[%s1784_s6 + $0x10] sm:$0xff]  ;;  %v600_v19 = vld [vmem:[%s1784_s6 + $0x18] sm:$0xff]  ;;  %s996_s24 = sshll.u32 %s1468_s9, 7  ;;  %s875_s14 = sshll.u32 %s1680_s21, 4  ;;  %vm859_vm4 = vcmask 253952   ;;  %s1735_s14 = int_to_ptr.vmem [resolvable:$true] %s875_s14 }
  0x88   : > { %858 = vst.msk [vmem:[%s1680_s21] sm:$0xff] %vm370_vm1, %v365_v12  ;;  %1094 = vmatpush3.bf16.msra.mxu1 %v1093_v9  ;;  %1089 = vmatprep.subr.bf16.mxu0 %v1398_v0  ;;  %v597_v15 = vld [vmem:[%s1784_s6] sm:$0xff]  ;;  %v598_v16 = vld [vmem:[%s1784_s6 + $0x8] sm:$0xff]  ;;  %v1108_v20 = vpack.c.bf16 %v600_v19, %v599_v18  ;;  %v594_v23 = vsub.s32 0, %v593_v22  ;;  %v518_v30 = vld [vmem:[#allocation7] sm:$0xff]  ;;  %s1733_s20 = scalar_lea.hbm %s1786_s8, %s996_s24  ;;  %s862_s12 = scalar_lea.sflag [#allocation4], %s1646_s27 }
  0x89   : > { %1095 = vmatprep.subr.bf16.mxu1 %v1398_v0  ;;  %v1105_v17 = vpack.c.bf16 %v598_v16, %v597_v15  ;;  %v519_v31 = vld [vmem:[#allocation7 + $0x8] sm:$0xff]  ;;  %v520_v33 = vld [vmem:[#allocation7 + $0x10] sm:$0xff]  ;;  %v521_v34 = vld [vmem:[#allocation7 + $0x18] sm:$0xff]  ;;  %s1316_s11 = scalar_lea.vmem %s1735_s14, 128  ;;  %s1401_s9 = smov [#allocation10]  }
  0x8a   : > { %v1099_v32 = vpack.c.bf16 %v519_v31, %v518_v30  ;;  %v1102_v35 = vpack.c.bf16 %v521_v34, %v520_v33  ;;  %v694_v36 = vld [vmem:[%s1785_s7] sm:$0xf]  ;;  %v780_v60 = vld [vmem:[#allocation8] sm:$0xff]  ;;  %v781_v61 = vld [vmem:[#allocation8 + $0x8] sm:$0xff]  ;;  %p1317_p10 = scmp.ne.s32.totalorder %s1735_s14, %s1316_s11  ;;  %s1320_s13 = sshll.u32 %s1401_s9, 4  ;;  %s1321_s13 = int_to_ptr.vmem [resolvable:$false] %s1320_s13 }
  0x8b   : > { %1091 = vmatpush3.bf16.msra.mxu0 %v1090_v13  ;;  %v1111_v62 = vpack.c.bf16 %v781_v61, %v780_v60  ;;  %v782_v63 = vld [vmem:[#allocation8 + $0x10] sm:$0xff]  ;;  %s1322_s10 = scalar_lea.vmem %s1321_s13, 256  ;;  %p1323_p12 = scmp.lt.s32.totalorder %s1735_s14, %s1321_s13 }
  0x8c   : > { %1097 = vmatpush3.bf16.msra.mxu1 %v1096_v14  ;;  %1098 = vmatprep.subr.bf16.mxu0 %v1398_v0  ;;  %p1318_p3 = pnand %p1317_p10, %p1601_p5  ;;  %p1324_p1 = scmp.lt.s32.totalorder %s1322_s10, %s1316_s11 }
  0x8d   : > { %1104 = vmatprep.subr.bf16.mxu1 %v1398_v0 }
  0x8e   : > { %1035 = vmatmul.mubr.msk.f32.vlgmr.msra.gmra.mrb[0].mxu0 %vm370_vm1, %v365_v12  ;;  %p1319_p7 = pneg %p1318_p3  ;;  %p1325_p2 = por %p1324_p1, %p1323_p12 }
  0x8f   : > { %1046 = vmatmul.mubr.msk.f32.vlgmr.msra.gmra.mrb[0].mxu1 %vm370_vm1, %v365_v12  ;;  %1056 = vmatprep.mubr.msk.f32.mxu0 %vm1399_vm0, %v1400_v1 }
  0x90   : > { %1106 = vmatpush3.bf16.msra.mxu1 %v1105_v17  ;;  %1067 = vmatprep.mubr.msk.f32.mxu1 %vm1399_vm0, %v1400_v1  ;;  %p1326_p4 = pnand %p1325_p2, %p1319_p7 }
  0x91   : > { %1107 = vmatprep.subr.bf16.mxu1 %v1398_v0  ;;  %1100 = vmatpush3.bf16.msra.mxu0 %v1099_v32 }
  0x92   : > { %1101 = vmatprep.subr.bf16.mxu0 %v1398_v0 }
  0x94   : > { %1109 = vmatpush3.bf16.msra.mxu1 %v1108_v20 }
  0x95   : > { %1110 = vmatprep.subr.bf16.mxu1 %v1398_v0  ;;  %1103 = vmatpush3.bf16.msra.mxu0 %v1102_v35 }
  0x96   : > { %1070 = vmatprep.subr.mxu0 %v1400_v1 }
  0x98   : > { %1057 = vmatmul.mubr.msk.f32.vlgmr.msra.gmra.mrb[2].mxu0 %vm370_vm1, %v365_v12  ;;  %v784_v12 = vld [vmem:[%s1783_s5] sm:$0x1] }
  0x99   : > { %1071 = vmatpush3.msk.msra.mxu0 %vm698_vm2, %v694_v36  ;;  %1072 = vmatprep.mubr.msk.f32.mxu0 %vm1399_vm0, %v1400_v1 }
 0x161   : > { %v440_v24 = vpop.f32.mrb[0].mxu0 }
 0x162   : > { %v595_v25 = vrot.slane %v440_v24, %v594_v23  ;;  %v1036_v26 = vpop.f32.mrb[1].mxu0  ;;  %v514_v27 = vpop.f32.mrb[0].mxu1 }
 0x163   : > { %v1047_v28 = vpop.f32.mrb[1].mxu1 }
 0x164   : > { %v596_v29 = vmul.f32 %v595_v25, %v514_v27 }
 0x166   : > { %1068 = vmatmul.mubr.msk.f32.vlgmr.msra.gmra.mrb[2].mxu1 %vm370_vm1, %v596_v29 }
 0x167   : > { %1083 = vmatprep.mubr.msk.f32.mxu1 %vm1399_vm0, %v1400_v1  ;;  %1112 = vmatpush3.bf16.msra.mxu1 %v1111_v62  ;;  %v783_v1 = vld [vmem:[#allocation8 + $0x18] sm:$0xff] }
 0x168   : > { %1113 = vmatprep.subr.bf16.mxu1 %v1398_v0  ;;  %v1114_v2 = vpack.c.bf16 %v783_v1, %v782_v63 }
 0x16b   : > { %v588_v58 = vpop.f32.mrb[2].mxu0  ;;  %1115 = vmatpush3.bf16.msra.mxu1 %v1114_v2 }
 0x16c   : > { %v1058_v59 = vpop.f32.mrb[3].mxu0 }
 0x239   : > { %v670_v37 = vpop.f32.mrb[2].mxu1 }
 0x23a   : > { %v675_v38 = vsel %vm674_vm3, %v670_v37, -inf  ;;  %v1069_v39 = vpop.f32.mrb[3].mxu1 }
 0x23b   : > { %v676_v40 = vrot.slane %v675_v38, 4 }
 0x23d   : > { %v677_v41 = vmax.f32 %v675_v38, %v676_v40 }
 0x23f   : > { %v678_v42 = vrot.slane %v677_v41, 2 }
 0x241   : > { %v679_v43 = vmax.f32 %v677_v41, %v678_v42 }
 0x243   : > { %v680_v44 = vrot.slane %v679_v43, 1 }
 0x245   : > { %v681_v45 = vmax.f32 %v679_v43, %v680_v44 }
 0x247   : > { %v682_v46 = vsub.f32 %v670_v37, %v681_v45 }
 0x249   : > { %v683_v47 = vmul.f32 1.442695, %v682_v46 }
 0x24b   : > { %1198 = vpow2.f32 %v683_v47 }
 0x255   : > { %v1199_v48 = vpop.eup %1198 }
 0x256   : > { %v685_v49 = vsel %vm674_vm3, %v1199_v48, 0.0 }
 0x257   : > { %v686_v50 = vrot.slane %v685_v49, 4 }
 0x259   : > { %v687_v51 = vadd.f32 %v686_v50, %v685_v49 }
 0x25b   : > { %v688_v52 = vrot.slane %v687_v51, 2 }
 0x25d   : > { %v689_v53 = vadd.f32 %v688_v52, %v687_v51 }
 0x25f   : > { %v690_v54 = vrot.slane %v689_v53, 1 }
 0x261   : > { %v691_v55 = vadd.f32 %v690_v54, %v689_v53 }
 0x263   : > { %1200 = vrcp.f32 %v691_v55 }
 0x26d   : > { %v1201_v56 = vpop.eup %1200 }
 0x26e   : > { %v693_v57 = vmul.f32 %v1201_v56, %v1199_v48 }
 0x270   : > { %1073 = vmatmul.mubr.msk.f32.vlgmr.msra.gmra.mrb[4].mxu0 %vm674_vm3, %v693_v57 }
 0x343   : > { %v768_v3 = vpop.f32.mrb[4].mxu0 }
 0x344   : > { %v772_v4 = vmul.f32 %v768_v3, %v588_v58  ;;  %v1074_v5 = vpop.f32.mrb[5].mxu0 }
 0x346   : > { %v773_v6 = vsel %vm370_vm1, %v772_v4, 0.0 }
 0x347   : > { %v774_v7 = vrot.slane %v773_v6, 4 }
 0x349   : > { %v775_v8 = vadd.f32 %v774_v7, %v773_v6 }
 0x34b   : > { %v776_v9 = vrot.slane %v775_v8, 2 }
 0x34d   : > { %v777_v10 = vadd.f32 %v776_v9, %v775_v8 }
 0x34f   : > { %v778_v11 = vrot.slane %v777_v10, 1 }
 0x351   : > { %v779_v0 = vadd.f32 %v778_v11, %v777_v10 }
 0x353   : > { %1084 = vmatmul.mubr.msk.f32.vlgmr.msra.gmra.mrb[4].mxu1 %vm370_vm1, %v779_v0 }
 0x426   : > { %v854_v13 = vpop.f32.mrb[4].mxu1 }
 0x427   : > { %v855_v14 = vadd.f32 %v854_v13, %v784_v12  ;;  %v1085_v15 = vpop.f32.mrb[5].mxu1 }
 0x429   : > { %860 = vst.msk [vmem:[%s1680_s21] sm:$0x1] %vm859_vm4, %v855_v14 }
 0x42a   : > { %1329 = shalt.err (!%p1326_p4)
}
 0x42b   : > { %s1330_s27 = scalar_lea.hbm %s1733_s20, 128  ;;  %s1334_s15 = scalar_lea.hbm %s1786_s8, 256 }
 0x42c   : > { %p1331_p0 = scmp.ne.s32.totalorder %s1733_s20, %s1330_s27  ;;  %p1335_p11 = scmp.lt.u32.totalorder %s1733_s20, %s1786_s8 }
 0x42d   : > { %p1336_p13 = scmp.lt.u32.totalorder %s1334_s15, %s1330_s27  ;;  %p1338_p10 = scmp.lt.u32.totalorder %s1330_s27, %s1733_s20 }
 0x42e   : > { %p1332_p9 = pnand %p1331_p0, %p1601_p5 }
 0x42f   : > { %p1337_p6 = por %p1336_p13, %p1335_p11 }
 0x430   : > { %p1333_p8 = pneg %p1332_p9 }
 0x431   : > { %p1339_p3 = por %p1338_p10, %p1337_p6 }
 0x433   : > { %p1340_p7 = pnand %p1339_p3, %p1333_p8 }
 0x435   : > { %1343 = shalt.err (!%p1340_p7)
}
 0x436   : > { %1130 = dma.vmem_to_hbm [thread:$0]  (%p1601_p5), %s1735_s14, 128, %s1733_s20, %s862_s12  }
 0x437 PF: > { %s1808_s24 = sld [smem:[#allocation15_spill]]  ;;  %s1809_s16 = sld [smem:[#allocation16_spill]] }
 0x438   : > { %p1811_p1 = scmp.ge.s32.totalorder %s1390_s30, 2 }
 0x43d   : > { %s887_s25 = sand.u32 1, %s1808_s24   ;;  %p1810_p12 = scmp.ne.s32.totalorder %s1809_s16, 0 }
 0x43e   : > { %s888_s11 = scalar_lea.sflag [#allocation4], %s887_s25 }
 0x43f   : > { %p1147_p2 = pnand %p1811_p1, %p1810_p12 }
 0x441   : > { %1373 = dma.done.wait (!%p1147_p2), %s888_s11, 128  }
 0x442   : > { %1375 = vsyncadd (!%p1147_p2), %s888_s11, 4294967168  ;;  %p23_p4 = scmp.ge.s32.totalorder %s1587_s26, 4   ;;  %s1812_s27 = smov %s1382_s28 }
 0x443   : > { %s1813_s28 = smov %s1386_s29  ;;  %s1814_s29 = smov %s1597_s22 }
 0x444   : > { %s1815_s30 = smov %s1587_s26  ;;  %25 = sbr.rel (!%p23_p4) target bundleno = 7 (0x7), region = 109 }
 0x44b   :  { %893 = vsyncpa [#allocation3], 1 }
 0x44c   :  { %895 = vsyncpa [#allocation3 + $0x1], 1 }
 0x44d   :  { %896 = vsyncpa [#allocation6], 1 }
 0x44e   :  { %897 = vsyncpa [#allocation9], 1 }
 0x44f   :  { %898 = vsyncpa [#allocation4], 1 }
 0x450   :  { %900 = vsyncpa [#allocation4 + $0x1], 1 }

</bundles_post_ra>
